<compile_context>
chip_gen: v6e
topology: v6e:2x2x1
jax: 0.10.0
libtpu: 0.0.40
codegen_flags: <defaults>
</compile_context>

<pallas_src>
import jax
import jax.numpy as jnp
from jax.experimental import pallas as pl
from jax.experimental.pallas import tpu as pltpu

_LANES = 128          # vreg lane width
_MAX_TILE_ROWS = 512  # 512 x 128 x 4B = 256 KiB per f32 buffer (double-buffered)


def _logreg_kernel(w_ref, b_ref, x_ref, o_ref):
    # w_ref / b_ref are (1,) scalars in SMEM; x_ref / o_ref are (tile_rows, 128)
    # VMEM tiles.  Pure elementwise: multiply-add on the VPU, sigmoid's
    # exp/recip land on the EUP slot.
    w = w_ref[0]
    b = b_ref[0]
    o_ref[...] = jax.nn.sigmoid(x_ref[...] * w + b)


def logistic_regression_forward(x, weight, bias):
    """x: (N, 1) f32, weight: (1, 1) f32, bias: (1,) f32 -> (N, 1) f32."""
    n, f = x.shape
    assert f == 1
    w_scalar = weight.reshape((1,)).astype(jnp.float32)
    b_scalar = bias.reshape((1,)).astype(jnp.float32)

    # ---- lane-dense repacking: (N, 1) column -> (rows, 128) slab ------------
    rows = pl.cdiv(n, _LANES)
    rows = ((rows + 7) // 8) * 8                     # sublane multiple of 8
    if rows <= _MAX_TILE_ROWS:
        tile_rows = rows                             # single grid step
    else:
        tile_rows = _MAX_TILE_ROWS
        rows = ((rows + tile_rows - 1) // tile_rows) * tile_rows
    padded_n = rows * _LANES

    x_flat = x.reshape((n,)).astype(jnp.float32)
    x_flat = jnp.pad(x_flat, (0, padded_n - n))      # zero-pad tail (sliced off)
    x_slab = x_flat.reshape((rows, _LANES))

    grid = (rows // tile_rows,)

    out_slab = pl.pallas_call(
        _logreg_kernel,
        out_shape=jax.ShapeDtypeStruct((rows, _LANES), jnp.float32),
        grid=grid,
        in_specs=[
            pl.BlockSpec(memory_space=pltpu.SMEM),               # weight scalar
            pl.BlockSpec(memory_space=pltpu.SMEM),               # bias scalar
            pl.BlockSpec((tile_rows, _LANES), lambda i: (i, 0)),  # x tile
        ],
        out_specs=pl.BlockSpec((tile_rows, _LANES), lambda i: (i, 0)),
        compiler_params=pltpu.CompilerParams(
            dimension_semantics=("parallel",),
        ),
    )(w_scalar, b_scalar, x_slab)

    # ---- un-pack back to the original (N, 1) layout --------------------------
    return out_slab.reshape((padded_n,))[:n].reshape((n, 1))


if __name__ == "__main__":
    key = jax.random.PRNGKey(0)
    kx, kw, kb, kx2 = jax.random.split(key, 4)

    # Deterministic parameter init mimicking torch.nn.Linear(1, 1):
    # uniform(-1/sqrt(in_features), 1/sqrt(in_features)) = uniform(-1, 1).
    weight = jax.random.uniform(kw, (1, 1), dtype=jnp.float32, minval=-1.0, maxval=1.0)
    bias = jax.random.uniform(kb, (1,), dtype=jnp.float32, minval=-1.0, maxval=1.0)

    # Small shape consistent with the module: batch=8, in_features=1.
    x = jax.random.normal(kx, (8, 1), dtype=jnp.float32)
    y = jax.block_until_ready(logistic_regression_forward(x, weight, bias))
    y_ref = jax.nn.sigmoid(x @ weight.T + bias)
    assert y.shape == (8, 1)
    assert jnp.allclose(y, y_ref, atol=1e-6, rtol=1e-6)

    # Second check: N not divisible by 128 exercises the padding / slab path.
    x2 = jax.random.normal(kx2, (1000, 1), dtype=jnp.float32)
    y2 = jax.block_until_ready(logistic_regression_forward(x2, weight, bias))
    y2_ref = jax.nn.sigmoid(x2 @ weight.T + bias)
    assert y2.shape == (1000, 1)
    assert jnp.allclose(y2, y2_ref, atol=1e-6, rtol=1e-6)

    print("KERNEL_OK")
</pallas_src>

<mosaic_0001>
module attributes {stable_mosaic.version = 11 : i64} {
  func.func @_logreg_kernel(%arg0: i32, %arg1: memref<1xf32, #tpu.memory_space<smem>>, %arg2: memref<1xf32, #tpu.memory_space<smem>>, %arg3: memref<8x128xf32, #tpu.memory_space<vmem>>, %arg4: memref<8x128xf32, #tpu.memory_space<vmem>>) attributes {dimension_semantics = [#tpu.dimension_semantics<parallel>], iteration_bounds = array<i64: 1>, scalar_prefetch = 0 : i64, scratch_operands = 0 : i64, tpu.core_type = #tpu.core_type<tc>, window_params = [{transform_indices = @transform_0, window_bounds = array<i64: 1>}, {transform_indices = @transform_1, window_bounds = array<i64: 1>}, {transform_indices = @transform_2, window_bounds = array<i64: 8, 128>}, {transform_indices = @transform_3, window_bounds = array<i64: 8, 128>}]} {
    %c0 = arith.constant 0 : index
    %0 = memref.load %arg1[%c0] : memref<1xf32, #tpu.memory_space<smem>>
    %c0_0 = arith.constant 0 : index
    %1 = memref.load %arg2[%c0_0] : memref<1xf32, #tpu.memory_space<smem>>
    %c0_1 = arith.constant 0 : index
    %c0_2 = arith.constant 0 : index
    %2 = vector.load %arg3[%c0_1, %c0_2] : memref<8x128xf32, #tpu.memory_space<vmem>>, vector<8x128xf32>
    %3 = vector.broadcast %0 : f32 to vector<8x128xf32>
    %4 = arith.mulf %2, %3 : vector<8x128xf32>
    %5 = vector.broadcast %1 : f32 to vector<8x128xf32>
    %6 = arith.addf %4, %5 : vector<8x128xf32>
    %7 = arith.negf %6 : vector<8x128xf32>
    %8 = math.exp %7 : vector<8x128xf32>
    %cst = arith.constant 1.000000e+00 : f32
    %9 = vector.broadcast %cst : f32 to vector<8x128xf32>
    %10 = arith.addf %9, %8 : vector<8x128xf32>
    %11 = arith.divf %9, %10 : vector<8x128xf32>
    %c0_3 = arith.constant 0 : index
    %c0_4 = arith.constant 0 : index
    %12 = vector.load %arg4[%c0_3, %c0_4] : memref<8x128xf32, #tpu.memory_space<vmem>>, vector<8x128xf32>
    tpu.vector_store %arg4[%c0_3, %c0_4], %11 {strides = array<i32>} : memref<8x128xf32, #tpu.memory_space<vmem>>, vector<8x128xf32>,
    return
  }
  func.func @transform_0(%arg0: i32) -> i32 {
    %c0_i32 = arith.constant 0 : i32
    %c0_i32_0 = arith.constant 0 : i32
    return %c0_i32 : i32
  }
  func.func @transform_1(%arg0: i32) -> i32 {
    %c0_i32 = arith.constant 0 : i32
    %c0_i32_0 = arith.constant 0 : i32
    return %c0_i32 : i32
  }
  func.func @transform_2(%arg0: i32) -> (i32, i32) {
    %c0_i32 = arith.constant 0 : i32
    %c0_i32_0 = arith.constant 0 : i32
    return %arg0, %c0_i32 : i32, i32
  }
  func.func @transform_3(%arg0: i32) -> (i32, i32) {
    %c0_i32 = arith.constant 0 : i32
    %c0_i32_0 = arith.constant 0 : i32
    return %arg0, %c0_i32 : i32, i32
  }
}

</mosaic_0001>

<bundles_post_ra>
// kernel: tpu_custom_call.1
= control target key start
LH: loop header
LB: loop body
LE: loop exit
PB: predicated region body
PF: predicated region fallthrough
CT: control target
= control target key end

     0   :  { %10 = vsyncpa [#allocation5], 0  ;;  %s143_s0 = inlined_call_operand.<no memory space> [shape: f32[1], index: 0, kind: input, shape index: {}]   ;;  %s144_s1 = inlined_call_operand.<no memory space> [shape: f32[1], index: 1, kind: input, shape index: {}]   ;;  %s145_s2 = inlined_call_operand.hbm [shape: f32[8,128], index: 2, kind: input, shape index: {}]   ;;  %s146_s3 = inlined_call_operand.hbm [shape: f32[8,128], index: 3, kind: output, shape index: {}]  }
   0x1   :  { %11 = vsyncpa [#allocation6], 0  ;;  %s109_s12 = smov [#allocation4]  }
   0x2   :  { %s22_s13 = sshll.u32 %s109_s12, 4  ;;  %s23_s13 = int_to_ptr.vmem [resolvable:$true] %s22_s13 }
   0x3   :  { %s73_s14 = scalar_lea.vmem %s23_s13, 128  ;;  %p78_p1 = scmp.lt.s32.totalorder %s23_s13, %s23_s13 }
   0x4   :  { %p74_p0 = scmp.ne.s32.totalorder %s23_s13, %s73_s14  ;;  %p79_p2 = scmp.lt.s32.totalorder %s73_s14, %s73_s14 }
   0x6   :  { %p80_p3 = por %p79_p2, %p78_p1 }
   0x8   :  { %p81_p4 = pnand %p80_p3, %p74_p0 }
   0xa   :  { %84 = shalt.err (!%p81_p4)
}
   0xb   :  { %25 = dma.hbm_to_vmem [thread:$0]  %s145_s2, 128, %s23_s13, [#allocation5]  }
   0xc   :  { %105 = dma.done.wait [#allocation5], 128  }
   0xd   :  { %106 = vsyncadd [#allocation5], 4294967168  ;;  %v32_v0 = vstv %s143_s0  ;;  %v31_v1 = vld [vmem:[#allocation4] sm:$0xff]  ;;  %v34_v2 = vstv %s144_s1  ;;  %s110_s21 = smov [#allocation7]  }
   0xe   :  { %v33_v3 = vmul.f32 %v32_v0, %v31_v1  ;;  %s49_s2 = sshll.u32 %s110_s21, 4  ;;  %s50_s2 = int_to_ptr.vmem [resolvable:$true] %s49_s2 }
   0xf   :  { %s85_s22 = scalar_lea.vmem %s50_s2, 128  ;;  %p90_p6 = scmp.lt.s32.totalorder %s50_s2, %s50_s2 }
  0x10   :  { %v35_v4 = vadd.f32 %v34_v2, %v33_v3  ;;  %p86_p5 = scmp.ne.s32.totalorder %s50_s2, %s85_s22  ;;  %p91_p7 = scmp.lt.s32.totalorder %s85_s22, %s85_s22 }
  0x12   :  { %v58_v5 = vmul.f32 -1.442695, %v35_v4  ;;  %p92_p8 = por %p91_p7, %p90_p6 }
  0x14   :  { %61 = vpow2.f32 %v58_v5  ;;  %p93_p9 = pnand %p92_p8, %p86_p5 }
  0x21   :  { %v62_v6 = vpop.eup %61 }
  0x22   :  { %v39_v7 = vadd.f32 1.0, %v62_v6 }
  0x24   :  { %63 = vrcp.f32 %v39_v7 }
  0x31   :  { %v64_v8 = vpop.eup %63 }
  0x32   :  { %42 = vst [vmem:[#allocation7] sm:$0xff] %v64_v8 }
  0x33   :  { %96 = shalt.err (!%p93_p9)
}
  0x34   :  { %52 = dma.vmem_to_hbm [thread:$0]  %s50_s2, 128, %s146_s3, [#allocation6]  }
  0x35   :  { %107 = dma.done.wait [#allocation6], 128  }
  0x36   :  { %108 = vsyncadd [#allocation6], 4294967168 }
  0x37   :  { %56 = vsyncpa [#allocation5], 1 }
  0x38   :  { %57 = vsyncpa [#allocation6], 1 }

</bundles_post_ra>
